<compile_context>
chip_gen: v5e
topology: v5e:2x2
jax: 0.10.0
libtpu: 0.0.40
codegen_flags: <defaults>
</compile_context>

<pallas_src>
import functools

import jax
import jax.numpy as jnp
from jax import lax
from jax.experimental import pallas as pl
from jax.experimental.pallas import tpu as pltpu

ALPHA = 0.25
GAMMA = 2            # gamma==2 implemented as pe*pe; a non-integer gamma would need a pow.
LANES = 128
MAX_ROW_TILE = 8192  # (8192,128) f32 = 4 MiB/block; 2 streams double-buffered ~16 MiB.
N_SPLITS = 2         # leading "parallel" grid axis; shards across TCs on v7x, no-op elsewhere.


def _round_up(x, m):
    return (x + m - 1) // m * m


def _focal_loss_kernel(logits_ref, label_ref, out_ref, acc_ref, *,
                       n_valid_blocks, rows_in_last, row_tile,
                       blocks_per_split, has_dummy):
    c = pl.program_id(0)          # parallel split (megacore)
    i = pl.program_id(1)          # reduction step within this split

    @pl.when(i == 0)
    def _():
        acc_ref[...] = jnp.zeros_like(acc_ref)

    x = logits_ref[...].astype(jnp.float32)   # no-op for f32 inputs, cheap convert for bf16
    m = label_ref[...] != 0                   # binary {0,1} labels -> boolean mask, no f32 convert

    # Fused sigmoid / log-sigmoid: one exp, one log1p, one approx reciprocal per element.
    e = jnp.exp(-jnp.abs(x))
    sp = jnp.log1p(e)                               # softplus(-|x|)
    log_probs = jnp.minimum(x, 0.0) - sp            # log(sigmoid(x))
    log_1_probs = -jnp.maximum(x, 0.0) - sp         # log(1 - sigmoid(x))
    d = 1.0 + e
    inv = pl.reciprocal(d, approx=True)             # EUP vrcp (own bundle slot)
    inv = inv * (2.0 - d * inv)                     # one Newton step -> ~f32 accuracy
    probs = jnp.where(x >= 0.0, inv, e * inv)       # sigmoid(x)

    # Binary-label formulation (exact for {0,1} labels):
    #   |y - p|         = where(y, 1-p, p)
    #   y*a*lp + (1-y)*(1-a)*l1p = where(y, a*lp, (1-a)*l1p)
    pe = jnp.where(m, 1.0 - probs, probs)
    base = jnp.where(m, ALPHA * log_probs, (1.0 - ALPHA) * log_1_probs)
    loss = base * (-(pe * pe))                      # * -|y - p|**GAMMA, GAMMA == 2

    def accum(v):
        # Reduce sublane-groups (pure VALU adds, same op count as a full-tile +=) into the
        # small (8, LANES) accumulator -> no per-step full-tile acc re-read/write.
        acc_ref[...] += v.reshape(-1, 8, LANES).sum(axis=0)

    g = c * blocks_per_split + i                    # global block index (small ints, no overflow)
    last = n_valid_blocks - 1
    ragged = rows_in_last != row_tile               # Python bool: is there a ragged last block?

    if not ragged and not has_dummy:
        accum(loss)                                 # hot path: no mask, no guard
    else:
        full_pred = (g < last) if ragged else (g <= last)

        @pl.when(full_pred)
        def _():
            accum(loss)

        if ragged:
            @pl.when(g == last)
            def _():
                # Row-level mask for the single ragged block only (garbage rows -> 0).
                r = lax.broadcasted_iota(jnp.int32, loss.shape, 0)
                accum(jnp.where(r < rows_in_last, loss, 0.0))
        # g > last (dummy block from rounding blocks to n_splits): accumulate nothing.

    @pl.when(i == pl.num_programs(1) - 1)
    def _():
        out_ref[...] = acc_ref[...][None]           # (1, 8, LANES) lane-dense partial


def focal_loss_v1(logits, label):
    """FocalLossV1 forward (alpha=0.25, gamma=2, reduction='mean'); assumes binary labels."""
    numel = logits.size

    # Free flat reshapes; keep native dtypes (no extra HBM pass for casts or padding).
    x_flat = logits.reshape(-1)
    y_flat = label.reshape(-1)

    rem = numel % LANES
    if rem:
        # TODO(synk): rare non-lane-aligned sizes take a one-off pad (extra HBM copy).
        # Pad values are chosen so padded elements contribute exactly 0 loss (no mask needed).
        pad = LANES - rem
        x_flat = jnp.pad(x_flat, (0, pad), constant_values=-100.0)
        y_flat = jnp.pad(y_flat, (0, pad), constant_values=0)

    rows = x_flat.size // LANES
    x2 = x_flat.reshape(rows, LANES)
    y2 = y_flat.reshape(rows, LANES)

    row_tile = min(MAX_ROW_TILE, _round_up(rows, 8))
    n_valid_blocks = pl.cdiv(rows, row_tile)
    n_splits = N_SPLITS if n_valid_blocks >= N_SPLITS else 1
    blocks_per_split = pl.cdiv(n_valid_blocks, n_splits)
    n_blocks_padded = n_splits * blocks_per_split
    has_dummy = n_blocks_padded > n_valid_blocks
    rows_in_last = rows - (n_valid_blocks - 1) * row_tile   # == row_tile if evenly divisible

    kernel = functools.partial(
        _focal_loss_kernel,
        n_valid_blocks=n_valid_blocks,
        rows_in_last=rows_in_last,
        row_tile=row_tile,
        blocks_per_split=blocks_per_split,
        has_dummy=has_dummy,
    )

    if has_dummy:
        # Clamp dummy blocks onto the last valid block (kernel skips their accumulation).
        def blk(c, i):
            return (jnp.minimum(c * blocks_per_split + i, n_valid_blocks - 1), 0)
    else:
        def blk(c, i):
            return (c * blocks_per_split + i, 0)

    partials = pl.pallas_call(
        kernel,
        out_shape=jax.ShapeDtypeStruct((n_splits, 8, LANES), jnp.float32),
        grid_spec=pltpu.PrefetchScalarGridSpec(
            num_scalar_prefetch=0,
            grid=(n_splits, blocks_per_split),
            in_specs=[
                pl.BlockSpec((row_tile, LANES), blk),
                pl.BlockSpec((row_tile, LANES), blk),
            ],
            out_specs=pl.BlockSpec((1, 8, LANES), lambda c, i: (c, 0, 0)),
            scratch_shapes=[pltpu.VMEM((8, LANES), jnp.float32)],
        ),
        compiler_params=pltpu.CompilerParams(
            dimension_semantics=("parallel", "arbitrary"),
            vmem_limit_bytes=32 * 1024 * 1024,
        ),
    )(x2, y2)

    # reduction='mean' over the true element count.
    return jnp.sum(partials) / jnp.float32(numel)


def _focal_loss_ref(logits, label):
    """Pure-JAX reference matching the PyTorch module exactly."""
    x = logits.astype(jnp.float32)
    y = label.astype(jnp.float32)
    probs = jax.nn.sigmoid(x)
    coeff = -(jnp.abs(y - probs) ** GAMMA)
    sp_neg = -jnp.log1p(jnp.exp(-x))   # F.softplus(x, -1, 50) on its selected branch
    sp_pos = jnp.log1p(jnp.exp(x))     # F.softplus(x,  1, 50) on its selected branch
    log_probs = jnp.where(x >= 0.0, sp_neg, x - sp_pos)
    log_1_probs = jnp.where(x >= 0.0, -x + sp_neg, -sp_pos)
    loss = y * ALPHA * log_probs + (1.0 - y) * (1.0 - ALPHA) * log_1_probs
    return jnp.mean(loss * coeff)


if __name__ == "__main__":
    key = jax.random.PRNGKey(0)
    k1, k2 = jax.random.split(key)
    B, C, H, W = 2, 4, 16, 16  # small NCHW, consistent with torch usage (e.g. 8,19,384,384)
    logits = jax.random.normal(k1, (B, C, H, W), dtype=jnp.float32)
    label = jax.random.bernoulli(k2, p=0.5, shape=(B, C, H, W)).astype(jnp.float32)

    loss = focal_loss_v1(logits, label)
    loss = jax.block_until_ready(loss)

    ref = _focal_loss_ref(logits, label)
    assert jnp.allclose(loss, ref, rtol=1e-5, atol=1e-6), (loss, ref)
    print("KERNEL_OK")
</pallas_src>

<mosaic_0001>
module attributes {stable_mosaic.version = 11 : i64} {
  func.func @_focal_loss_kernel(%arg0: i32, %arg1: i32, %arg2: memref<16x128xf32, #tpu.memory_space<vmem>>, %arg3: memref<16x128xf32, #tpu.memory_space<vmem>>, %arg4: memref<1x8x128xf32, #tpu.memory_space<vmem>>, %arg5: memref<8x128xf32, #tpu.memory_space<vmem>>) attributes {dimension_semantics = [#tpu.dimension_semantics<parallel>, #tpu.dimension_semantics<arbitrary>], iteration_bounds = array<i64: 1, 1>, scalar_prefetch = 0 : i64, scratch_operands = 1 : i64, tpu.core_type = #tpu.core_type<tc>, window_params = [{transform_indices = @transform_0, window_bounds = array<i64: 16, 128>}, {transform_indices = @transform_1, window_bounds = array<i64: 16, 128>}, {transform_indices = @transform_2, window_bounds = array<i64: 1, 8, 128>}]} {
    %c0_i32 = arith.constant 0 : i32
    %0 = arith.cmpi eq, %arg1, %c0_i32 : i32
    %1 = arith.extui %0 : i1 to i32
    %c0_i32_0 = arith.constant 0 : i32
    %2 = arith.cmpi ne, %1, %c0_i32_0 : i32
    scf.if %2 {
      %cst_22 = arith.constant 0.000000e+00 : f32
      %51 = vector.broadcast %cst_22 : f32 to vector<8x128xf32>
      %c0_23 = arith.constant 0 : index
      %c0_24 = arith.constant 0 : index
      %52 = vector.load %arg5[%c0_23, %c0_24] : memref<8x128xf32, #tpu.memory_space<vmem>>, vector<8x128xf32>
      tpu.vector_store %arg5[%c0_23, %c0_24], %51 {strides = array<i32>} : memref<8x128xf32, #tpu.memory_space<vmem>>, vector<8x128xf32>,
    } else {
    }
    %c0 = arith.constant 0 : index
    %c0_1 = arith.constant 0 : index
    %3 = vector.load %arg2[%c0, %c0_1] : memref<16x128xf32, #tpu.memory_space<vmem>>, vector<16x128xf32>
    %c0_2 = arith.constant 0 : index
    %c0_3 = arith.constant 0 : index
    %4 = vector.load %arg3[%c0_2, %c0_3] : memref<16x128xf32, #tpu.memory_space<vmem>>, vector<16x128xf32>
    %cst = arith.constant 0.000000e+00 : f32
    %5 = vector.broadcast %cst : f32 to vector<16x128xf32>
    %6 = arith.cmpf one, %4, %5 : vector<16x128xf32>
    %7 = math.absf %3 : vector<16x128xf32>
    %cst_4 = arith.constant 0.000000e+00 : f32
    %8 = vector.broadcast %cst_4 : f32 to vector<16x128xf32>
    %9 = arith.subf %8, %7 : vector<16x128xf32>
    %10 = math.exp %9 : vector<16x128xf32>
    %11 = math.log1p %10 : vector<16x128xf32>
    %cst_5 = arith.constant 0.000000e+00 : f32
    %12 = vector.broadcast %cst_5 : f32 to vector<16x128xf32>
    %13 = arith.minimumf %3, %12 : vector<16x128xf32>
    %14 = arith.subf %13, %11 : vector<16x128xf32>
    %cst_6 = arith.constant 0.000000e+00 : f32
    %15 = vector.broadcast %cst_6 : f32 to vector<16x128xf32>
    %16 = arith.maximumf %3, %15 : vector<16x128xf32>
    %cst_7 = arith.constant 0.000000e+00 : f32
    %17 = vector.broadcast %cst_7 : f32 to vector<16x128xf32>
    %18 = arith.subf %17, %16 : vector<16x128xf32>
    %19 = arith.subf %18, %11 : vector<16x128xf32>
    %cst_8 = arith.constant 1.000000e+00 : f32
    %20 = vector.broadcast %cst_8 : f32 to vector<16x128xf32>
    %21 = arith.addf %20, %10 : vector<16x128xf32>
    %22 = tpu.reciprocal %21 {approx = true} : vector<16x128xf32> -> vector<16x128xf32>
    %23 = arith.mulf %21, %22 : vector<16x128xf32>
    %cst_9 = arith.constant 2.000000e+00 : f32
    %24 = vector.broadcast %cst_9 : f32 to vector<16x128xf32>
    %25 = arith.subf %24, %23 : vector<16x128xf32>
    %26 = arith.mulf %22, %25 : vector<16x128xf32>
    %cst_10 = arith.constant 0.000000e+00 : f32
    %27 = vector.broadcast %cst_10 : f32 to vector<16x128xf32>
    %28 = arith.cmpf oge, %3, %27 : vector<16x128xf32>
    %29 = arith.mulf %10, %26 : vector<16x128xf32>
    %30 = arith.select %28, %26, %29 : vector<16x128xi1>, vector<16x128xf32>
    %cst_11 = arith.constant 1.000000e+00 : f32
    %31 = vector.broadcast %cst_11 : f32 to vector<16x128xf32>
    %32 = arith.subf %31, %30 : vector<16x128xf32>
    %33 = arith.select %6, %32, %30 : vector<16x128xi1>, vector<16x128xf32>
    %cst_12 = arith.constant 2.500000e-01 : f32
    %34 = vector.broadcast %cst_12 : f32 to vector<16x128xf32>
    %35 = arith.mulf %34, %14 : vector<16x128xf32>
    %cst_13 = arith.constant 7.500000e-01 : f32
    %36 = vector.broadcast %cst_13 : f32 to vector<16x128xf32>
    %37 = arith.mulf %36, %19 : vector<16x128xf32>
    %38 = arith.select %6, %35, %37 : vector<16x128xi1>, vector<16x128xf32>
    %39 = arith.mulf %33, %33 : vector<16x128xf32>
    %cst_14 = arith.constant 0.000000e+00 : f32
    %40 = vector.broadcast %cst_14 : f32 to vector<16x128xf32>
    %41 = arith.subf %40, %39 : vector<16x128xf32>
    %42 = arith.mulf %38, %41 : vector<16x128xf32>
    %c0_15 = arith.constant 0 : index
    %c0_16 = arith.constant 0 : index
    %43 = vector.load %arg5[%c0_15, %c0_16] : memref<8x128xf32, #tpu.memory_space<vmem>>, vector<8x128xf32>
    %44 = vector.shape_cast %42 : vector<16x128xf32> to vector<2x8x128xf32>
    %cst_17 = arith.constant dense<0.000000e+00> : vector<8x128xf32>
    %45 = vector.multi_reduction <add>, %44, %cst_17 [0] : vector<2x8x128xf32> to vector<8x128xf32>
    %46 = arith.addf %43, %45 : vector<8x128xf32>
    %c0_18 = arith.constant 0 : index
    %c0_19 = arith.constant 0 : index
    %47 = vector.load %arg5[%c0_18, %c0_19] : memref<8x128xf32, #tpu.memory_space<vmem>>, vector<8x128xf32>
    tpu.vector_store %arg5[%c0_18, %c0_19], %46 {strides = array<i32>} : memref<8x128xf32, #tpu.memory_space<vmem>>, vector<8x128xf32>,
    %c0_i32_20 = arith.constant 0 : i32
    %48 = arith.cmpi eq, %arg1, %c0_i32_20 : i32
    %49 = arith.extui %48 : i1 to i32
    %c0_i32_21 = arith.constant 0 : i32
    %50 = arith.cmpi ne, %49, %c0_i32_21 : i32
    scf.if %50 {
      %c0_22 = arith.constant 0 : index
      %c0_23 = arith.constant 0 : index
      %51 = vector.load %arg5[%c0_22, %c0_23] : memref<8x128xf32, #tpu.memory_space<vmem>>, vector<8x128xf32>
      %52 = vector.shape_cast %51 : vector<8x128xf32> to vector<1x8x128xf32>
      %c0_24 = arith.constant 0 : index
      %c0_25 = arith.constant 0 : index
      %c0_26 = arith.constant 0 : index
      %53 = vector.load %arg4[%c0_24, %c0_25, %c0_26] : memref<1x8x128xf32, #tpu.memory_space<vmem>>, vector<1x8x128xf32>
      tpu.vector_store %arg4[%c0_24, %c0_25, %c0_26], %52 {strides = array<i32>} : memref<1x8x128xf32, #tpu.memory_space<vmem>>, vector<1x8x128xf32>,
    } else {
    }
    return
  }
  func.func @transform_0(%arg0: i32, %arg1: i32) -> (i32, i32) {
    %c1_i32 = arith.constant 1 : i32
    %0 = arith.muli %arg0, %c1_i32 : i32
    %1 = arith.addi %0, %arg1 : i32
    %c0_i32 = arith.constant 0 : i32
    %c0_i32_0 = arith.constant 0 : i32
    return %1, %c0_i32 : i32, i32
  }
  func.func @transform_1(%arg0: i32, %arg1: i32) -> (i32, i32) {
    %c1_i32 = arith.constant 1 : i32
    %0 = arith.muli %arg0, %c1_i32 : i32
    %1 = arith.addi %0, %arg1 : i32
    %c0_i32 = arith.constant 0 : i32
    %c0_i32_0 = arith.constant 0 : i32
    return %1, %c0_i32 : i32, i32
  }
  func.func @transform_2(%arg0: i32, %arg1: i32) -> (i32, i32, i32) {
    %c0_i32 = arith.constant 0 : i32
    %c0_i32_0 = arith.constant 0 : i32
    %c0_i32_1 = arith.constant 0 : i32
    return %arg0, %c0_i32, %c0_i32_0 : i32, i32, i32
  }
}

</mosaic_0001>

<bundles_post_ra>
// kernel: tpu_custom_call.1
= control target key start
LH: loop header
LB: loop body
LE: loop exit
PB: predicated region body
PF: predicated region fallthrough
CT: control target
= control target key end

     0   :  { %7 = vsyncpa [#allocation4], 0  ;;  %s286_s0 = inlined_call_operand.hbm [shape: f32[16,128], index: 0, kind: input, shape index: {}]   ;;  %s287_s1 = inlined_call_operand.hbm [shape: f32[16,128], index: 1, kind: input, shape index: {}]   ;;  %s288_s2 = inlined_call_operand.hbm [shape: f32[1,8,128], index: 2, kind: output, shape index: {}]  }
   0x1   :  { %8 = vsyncpa [#allocation7], 0 }
   0x2   :  { %9 = vsyncpa [#allocation5], 0  ;;  %s18_s11 = sshll.u32 %s286_s0, 4  ;;  %s257_s12 = smov [#allocation3]   ;;  %s19_s11 = int_to_ptr.hbm [resolvable:$true] %s18_s11 }
   0x3   :  { %s20_s13 = sshll.u32 %s257_s12, 4  ;;  %s35_s16 = sshll.u32 %s287_s1, 4  ;;  %s21_s13 = int_to_ptr.vmem [resolvable:$true] %s20_s13  ;;  %s36_s16 = int_to_ptr.hbm [resolvable:$true] %s35_s16 }
   0x4   :  { %s258_s17 = smov 128   ;;  %s259_s18 = smov 8  }
   0x5   :  { %26 = dma.hbm_to_vmem [thread:$0]  %s19_s11, 256, %s21_s13, [#allocation4], %s258_s17, %s258_s17, %s259_s18  }
   0x6   :  { %s260_s19 = smov [#allocation6]  }
   0x7   :  { %s37_s20 = sshll.u32 %s260_s19, 4  ;;  %s38_s20 = int_to_ptr.vmem [resolvable:$true] %s37_s20 }
   0x8   :  { %43 = dma.hbm_to_vmem [thread:$0]  %s36_s16, 256, %s38_s20, [#allocation7], %s258_s17, %s258_s17, %s259_s18  }
   0x9   :  { %251 = dma.done.wait [#allocation4], 256  }
   0xa   :  { %252 = vsyncadd [#allocation4], 4294967040 }
   0xb   :  { %253 = dma.done.wait [#allocation7], 256  }
   0xc   :  { %254 = vsyncadd [#allocation7], 4294967040  ;;  %v61_v0 = vld [vmem:[#allocation3] sm:$0xff]  ;;  %v62_v1 = vld [vmem:[#allocation3 + $0x8] sm:$0xff]  ;;  %s261_s0 = smov [#allocation8]   ;;  %s151_s23 = sshll.u32 %s288_s2, 4  ;;  %s152_s23 = int_to_ptr.hbm [resolvable:$true] %s151_s23 }
   0xd   :  { %v67_v2 = vand.u32 2147483647, %v61_v0  ;;  %v68_v3 = vand.u32 2147483647, %v62_v1  ;;  %v97_v19 = vmax.f32 %v61_v0, 0.0  ;;  %v98_v23 = vmax.f32 %v62_v1, 0.0 }
   0xe   :  { %v93_v29 = vmin.f32 %v61_v0, 0.0  ;;  %v94_v33 = vmin.f32 %v62_v1, 0.0  ;;  %v63_v39 = vld [vmem:[#allocation6] sm:$0xff]  ;;  %v64_v40 = vld [vmem:[#allocation6 + $0x8] sm:$0xff]  ;;  %vm113_vm2 = vcmp.ge.f32.partialorder %v61_v0, 0.0  ;;  %vm114_vm3 = vcmp.ge.f32.partialorder %v62_v1, 0.0 }
   0xf   :  { %v69_v4 = vsub.f32 0.0, %v67_v2  ;;  %v70_v5 = vsub.f32 0.0, %v68_v3  ;;  %v99_v30 = vsub.f32 0.0, %v97_v19  ;;  %v100_v34 = vsub.f32 0.0, %v98_v23  ;;  %s149_s1 = sshll.u32 %s261_s0, 4  ;;  %s150_s1 = int_to_ptr.vmem [resolvable:$true] %s149_s1 }
  0x10   :  { %vm65_vm4 = vcmp.ne.f32.partialorder %v63_v39, 0.0  ;;  %vm66_vm5 = vcmp.ne.f32.partialorder %v64_v40, 0.0 }
  0x11   :  { %v71_v6 = vmul.f32 1.442695, %v69_v4  ;;  %v73_v7 = vmul.f32 1.442695, %v70_v5 }
  0x13   :  { %167 = vpow2.f32 %v71_v6 }
  0x14   :  { %169 = vpow2.f32 %v73_v7 }
  0x19   :  { %v168_v8 = vpop.eup %167 }
  0x1a   :  { %v170_v9 = vpop.eup %169  ;;  %v75_v10 = vadd.f32 1.0, %v168_v8  ;;  %v78_v11 = vmul.f32 -0.5, %v168_v8  ;;  %v81_v15 = vand.u32 2147483647, %v168_v8 }
  0x1b   :  { %v84_v12 = vadd.f32 1.0, %v170_v9  ;;  %v87_v13 = vmul.f32 -0.5, %v170_v9  ;;  %v90_v17 = vand.u32 2147483647, %v170_v9 }
  0x1c   :  { %171 = vlog2.f32 %v75_v10  ;;  %v79_v14 = vadd.f32 1.0, %v78_v11  ;;  %vm82_vm0 = vcmp.lt.f32.partialorder %v81_v15, 0.0004427343 }
  0x1d   :  { %173 = vlog2.f32 %v84_v12  ;;  %v88_v16 = vadd.f32 1.0, %v87_v13  ;;  %vm91_vm1 = vcmp.lt.f32.partialorder %v90_v17, 0.0004427343 }
  0x1e   :  { %175 = vrcp.f32 %v75_v10  ;;  %v80_v22 = vmul.f32 %v168_v8, %v79_v14 }
  0x1f   :  { %177 = vrcp.f32 %v84_v12  ;;  %v89_v26 = vmul.f32 %v170_v9, %v88_v16 }
  0x22   :  { %v172_v18 = vpop.eup %171 }
  0x23   :  { %v174_v20 = vpop.eup %173  ;;  %v77_v21 = vmul.f32 0.6931472, %v172_v18 }
  0x24   :  { %v176_v24 = vpop.eup %175  ;;  %v86_v25 = vmul.f32 0.6931472, %v174_v20 }
  0x25   :  { %v178_v27 = vpop.eup %177  ;;  %v107_v28 = vmul.f32 %v176_v24, %v75_v10  ;;  %v83_v32 = vsel %vm82_vm0, %v80_v22, %v77_v21 }
  0x26   :  { %v108_v31 = vmul.f32 %v178_v27, %v84_v12  ;;  %v92_v36 = vsel %vm91_vm1, %v89_v26, %v86_v25  ;;  %v95_v41 = vsub.f32 %v93_v29, %v83_v32  ;;  %v101_v42 = vsub.f32 %v99_v30, %v83_v32 }
  0x27   :  { %v109_v35 = vsub.f32 2.0, %v107_v28  ;;  %v96_v44 = vsub.f32 %v94_v33, %v92_v36  ;;  %v102_v45 = vsub.f32 %v100_v34, %v92_v36 }
  0x28   :  { %v110_v37 = vsub.f32 2.0, %v108_v31  ;;  %v123_v51 = vmul.f32 0.25, %v95_v41  ;;  %v125_v52 = vmul.f32 0.75, %v101_v42 }
  0x29   :  { %v111_v38 = vmul.f32 %v176_v24, %v109_v35  ;;  %v124_v54 = vmul.f32 0.25, %v96_v44  ;;  %v126_v55 = vmul.f32 0.75, %v102_v45 }
  0x2a   :  { %v112_v43 = vmul.f32 %v178_v27, %v110_v37  ;;  %v127_v59 = vsel %vm65_vm4, %v123_v51, %v125_v52 }
  0x2b   :  { %v115_v46 = vmul.f32 %v168_v8, %v111_v38  ;;  %v128_v61 = vsel %vm66_vm5, %v124_v54, %v126_v55 }
  0x2c   :  { %v116_v47 = vmul.f32 %v170_v9, %v112_v43 }
  0x2d   :  { %v117_v48 = vsel %vm113_vm2, %v111_v38, %v115_v46 }
  0x2e   :  { %v118_v49 = vsel %vm114_vm3, %v112_v43, %v116_v47  ;;  %v119_v50 = vsub.f32 1.0, %v117_v48 }
  0x2f   :  { %v120_v53 = vsub.f32 1.0, %v118_v49 }
  0x30   :  { %v121_v56 = vsel %vm65_vm4, %v119_v50, %v117_v48 }
  0x31   :  { %v122_v57 = vsel %vm66_vm5, %v120_v53, %v118_v49  ;;  %v129_v58 = vmul.f32 %v121_v56, %v121_v56 }
  0x32   :  { %v130_v60 = vmul.f32 %v122_v57, %v122_v57 }
  0x33   :  { %v131_v62 = vsub.f32 0.0, %v129_v58 }
  0x34   :  { %v132_v63 = vsub.f32 0.0, %v130_v60 }
  0x35   :  { %v133_v0 = vmul.f32 %v131_v62, %v127_v59 }
  0x36   :  { %v134_v1 = vmul.f32 %v132_v63, %v128_v61 }
  0x38   :  { %v136_v2 = vadd.f32 %v134_v1, %v133_v0 }
  0x3a   :  { %143 = vst [vmem:[#allocation8] sm:$0xff] %v136_v2 }
  0x3b   :  { %154 = dma.vmem_to_hbm [thread:$0]  %s150_s1, 128, %s152_s23, [#allocation5]  }
  0x3c   :  { %255 = dma.done.wait [#allocation5], 128  }
  0x3d   :  { %256 = vsyncadd [#allocation5], 4294967168 }
  0x3e   :  { %159 = vsyncpa [#allocation4], 1 }
  0x3f   :  { %160 = vsyncpa [#allocation7], 1 }
  0x40   :  { %161 = vsyncpa [#allocation5], 1 }

</bundles_post_ra>
